<compile_context>
chip_gen: v6e
topology: v6e:2x2x1
jax: 0.10.0
libtpu: 0.0.40
codegen_flags: <defaults>
</compile_context>

<pallas_src>
import math
import functools

import jax
import jax.numpy as jnp
from jax.experimental import pallas as pl
from jax.experimental.pallas import tpu as pltpu


# ----------------------------------------------------------------------------
# Kernels
# ----------------------------------------------------------------------------
def _equal_linear_kernel_f32(x_ref, w_ref, b_ref, o_ref, *,
                             scale, lr_mul, activation):
    # x_ref: (tm, tk)  w_ref: (tk, tn)  b_ref: (1, tn)  o_ref: (tm, tn) f32
    # o_ref's block index is constant along the k grid axis, so it stays
    # VMEM-resident and doubles as the accumulator (no scratch needed).
    k = pl.program_id(2)

    @pl.when(k == 0)
    def _():
        o_ref[...] = jnp.zeros_like(o_ref)

    o_ref[...] += jnp.dot(x_ref[...], w_ref[...],
                          preferred_element_type=jnp.float32)

    @pl.when(k == pl.num_programs(2) - 1)
    def _():
        out = o_ref[...] * scale + b_ref[...] * lr_mul
        if activation:
            # fused_leaky_relu: leaky_relu(., 0.2) * sqrt(2)
            out = jnp.where(out >= 0.0, out, 0.2 * out) * math.sqrt(2.0)
        o_ref[...] = out


def _equal_linear_kernel_acc(x_ref, w_ref, b_ref, o_ref, acc_ref, *,
                             scale, lr_mul, activation):
    # Same as above but with an f32 scratch accumulator for non-f32 outputs.
    k = pl.program_id(2)

    @pl.when(k == 0)
    def _():
        acc_ref[...] = jnp.zeros_like(acc_ref)

    acc_ref[...] += jnp.dot(x_ref[...], w_ref[...],
                            preferred_element_type=jnp.float32)

    @pl.when(k == pl.num_programs(2) - 1)
    def _():
        out = acc_ref[...] * scale + b_ref[...] * lr_mul
        if activation:
            out = jnp.where(out >= 0.0, out, 0.2 * out) * math.sqrt(2.0)
        o_ref[...] = out.astype(o_ref.dtype)


# ----------------------------------------------------------------------------
# Helpers
# ----------------------------------------------------------------------------
def _round_up(n, m):
    return ((n + m - 1) // m) * m


def _pick_divisor_tile(size, cap, base=128):
    """Largest multiple of `base` <= min(size, cap) that divides `size`.

    `size` must be a multiple of `base`, so the loop terminates at `base`."""
    t = max(base, min(size, (cap // base) * base))
    while size % t != 0:
        t -= base
    return t


def _pick_batch_tile(b, cap=512, base=8, max_waste=0.125):
    """Largest batch tile <= cap whose padding waste on `b` stays small."""
    b_pad = _round_up(b, base)
    t = max(base, min(b_pad, (cap // base) * base))
    while t > base and (_round_up(b_pad, t) - b) / b > max_waste:
        t -= base
    return t, _round_up(b_pad, t)


def prepare_equal_linear_params(weight, bias=None):
    """One-time parameter prep (hoisted out of the per-call path).

    Transposes W to MXU-native [in_dim, out_dim] (K on sublanes, N on lanes)
    and pads both dims to multiples of 128; bias is kept f32 and padded.
    """
    out_dim, in_dim = weight.shape
    k_pad = _round_up(in_dim, 128)
    n_pad = _round_up(out_dim, 128)

    w_kn = weight.T
    if (k_pad, n_pad) != (in_dim, out_dim):
        w_kn = jnp.pad(w_kn, ((0, k_pad - in_dim), (0, n_pad - out_dim)))

    if bias is None:
        b = jnp.zeros((out_dim,), jnp.float32)
    else:
        b = bias.astype(jnp.float32)
    if n_pad != out_dim:
        b = jnp.pad(b, (0, n_pad - out_dim))

    return w_kn, b.reshape(1, n_pad), (in_dim, out_dim)


# ----------------------------------------------------------------------------
# Forward
# ----------------------------------------------------------------------------
def equal_linear_prepared(x, w_kn, b_row, dims, *, lr_mul=1.0, activation=None):
    """EqualLinear.forward given prepared (transposed + padded) parameters.

    x:     [B, in_dim]
    w_kn:  [K_pad, N_pad]  (weight.T, padded to multiples of 128)
    b_row: [1, N_pad]      (f32 bias, padded)
    dims:  (in_dim, out_dim) of the original parameters
    """
    if activation not in (None, "fused_lrelu"):
        raise ValueError(f"unsupported activation: {activation!r}")

    in_dim, out_dim = dims
    B = x.shape[0]
    K_pad, N_pad = w_kn.shape
    scale = (1.0 / math.sqrt(in_dim)) * lr_mul

    # ---- tile selection ------------------------------------------------------
    # Exact divisors of the already-128-padded W dims (no extra W padding, no
    # tile-multiple round-up waste); batch tile allows <=12.5% pad waste.
    # Max footprint (tm=tn=512, tk=1024, f32) ~11 MiB incl. double buffers,
    # which is safe under v7x's 32 MiB scoped / 64 MiB physical VMEM.
    tk = _pick_divisor_tile(K_pad, 1024)
    tn = _pick_divisor_tile(N_pad, 512)
    tm, B_pad = _pick_batch_tile(B, cap=512)

    # Keep >=2 blocks along the parallel axes when possible so both v7x
    # TensorCores get work (megacore sharding needs >=2 parallel blocks).
    if (B_pad // tm) * (N_pad // tn) < 2:
        if N_pad >= 256:
            tn = _pick_divisor_tile(N_pad, N_pad // 2)
        elif B_pad >= 16:
            tm = _pick_divisor_tile(B_pad, B_pad // 2, base=8)

    grid = (B_pad // tm, N_pad // tn, K_pad // tk)

    # Pad x only when needed (weight/bias padding was done once in prepare).
    if (B_pad, K_pad) != x.shape:
        x = jnp.pad(x, ((0, B_pad - B), (0, K_pad - x.shape[1])))

    out_dtype = x.dtype
    f32_out = out_dtype == jnp.float32
    kernel = functools.partial(
        _equal_linear_kernel_f32 if f32_out else _equal_linear_kernel_acc,
        scale=scale, lr_mul=lr_mul, activation=activation is not None)

    elem = jnp.dtype(out_dtype).itemsize
    w_elem = jnp.dtype(w_kn.dtype).itemsize
    # double-buffered x / W / out / bias (+ f32 scratch on the bf16 path)
    vmem_bytes = (2 * (tm * tk * elem + tk * tn * w_elem + tm * tn * elem)
                  + (0 if f32_out else tm * tn * 4) + 2 * tn * 4)
    vmem_limit = int(max(vmem_bytes + (8 << 20), 32 << 20))

    flops = 2 * B_pad * N_pad * K_pad
    bytes_accessed = (B_pad * K_pad * elem                      # x read
                      + K_pad * N_pad * w_elem * grid[0]        # W re-streamed per i-tile
                      + B_pad * N_pad * elem                    # out write
                      + N_pad * 4)                              # bias

    out_p = pl.pallas_call(
        kernel,
        out_shape=jax.ShapeDtypeStruct((B_pad, N_pad), out_dtype),
        grid_spec=pltpu.PrefetchScalarGridSpec(
            num_scalar_prefetch=0,
            grid=grid,
            in_specs=[
                pl.BlockSpec((tm, tk), lambda i, j, k: (i, k)),   # x   [B, K]
                pl.BlockSpec((tk, tn), lambda i, j, k: (k, j)),   # W.T [K, N] (MXU-native)
                pl.BlockSpec((1, tn), lambda i, j, k: (0, j)),    # bias
            ],
            out_specs=pl.BlockSpec((tm, tn), lambda i, j, k: (i, j)),
            scratch_shapes=([] if f32_out
                            else [pltpu.VMEM((tm, tn), jnp.float32)]),
        ),
        compiler_params=pltpu.CompilerParams(
            dimension_semantics=("parallel", "parallel", "arbitrary"),
            vmem_limit_bytes=vmem_limit,
        ),
        cost_estimate=pl.CostEstimate(
            flops=int(flops), transcendentals=0,
            bytes_accessed=int(bytes_accessed)),
    )(x, w_kn, b_row)

    return out_p[:B, :out_dim]


def equal_linear(x, weight, bias, *, lr_mul=1.0, activation=None):
    """Convenience wrapper mirroring EqualLinear.forward.

    weight: [out_dim, in_dim] (PyTorch convention).  For repeated calls,
    prepare the parameters once with `prepare_equal_linear_params` and call
    `equal_linear_prepared` directly to avoid per-call weight transpose/pad.
    """
    w_kn, b_row, dims = prepare_equal_linear_params(weight, bias)
    return equal_linear_prepared(x, w_kn, b_row, dims,
                                 lr_mul=lr_mul, activation=activation)


# ----------------------------------------------------------------------------
# Reference + test
# ----------------------------------------------------------------------------
def _reference(x, weight, bias, *, lr_mul=1.0, activation=None):
    in_dim = x.shape[-1]
    scale = (1.0 / math.sqrt(in_dim)) * lr_mul
    out = x @ (weight * scale).T + bias * lr_mul
    if activation:
        out = jnp.where(out >= 0.0, out, 0.2 * out) * math.sqrt(2.0)
    return out


if __name__ == "__main__":
    key = jax.random.PRNGKey(0)
    k_x, k_w = jax.random.split(key)

    batch, in_dim, out_dim = 8, 32, 32
    lr_mul = 1.0
    bias_init = 0.0

    # Parameter init mirroring the module's __init__ (synthetic, deterministic):
    #   weight = randn(out_dim, in_dim) / lr_mul ; bias = full(out_dim, bias_init)
    x = jax.random.normal(k_x, (batch, in_dim), dtype=jnp.float32)
    weight = jax.random.normal(k_w, (out_dim, in_dim), dtype=jnp.float32) / lr_mul
    bias = jnp.full((out_dim,), bias_init, dtype=jnp.float32)

    # Prepare once (transpose + pad hoisted out of the per-call path).
    w_kn, b_row, dims = prepare_equal_linear_params(weight, bias)

    # Path 1: plain linear (activation=None)
    out_lin = jax.block_until_ready(
        equal_linear_prepared(x, w_kn, b_row, dims,
                              lr_mul=lr_mul, activation=None))
    # Path 2: fused leaky relu activation
    out_act = jax.block_until_ready(
        equal_linear_prepared(x, w_kn, b_row, dims,
                              lr_mul=lr_mul, activation="fused_lrelu"))

    # Sanity check against pure-JAX reference.
    ref_lin = _reference(x, weight, bias, lr_mul=lr_mul, activation=None)
    ref_act = _reference(x, weight, bias, lr_mul=lr_mul, activation="fused_lrelu")
    assert jnp.allclose(out_lin, ref_lin, atol=1e-5, rtol=1e-5)
    assert jnp.allclose(out_act, ref_act, atol=1e-5, rtol=1e-5)

    # bf16 fast path (MXU-native operands, f32 scratch accumulation).
    out_bf16 = jax.block_until_ready(
        equal_linear(x.astype(jnp.bfloat16), weight.astype(jnp.bfloat16), bias,
                     lr_mul=lr_mul, activation="fused_lrelu"))
    assert jnp.allclose(out_bf16.astype(jnp.float32), ref_act,
                        atol=5e-2, rtol=5e-2)

    print("KERNEL_OK")
</pallas_src>

<mosaic_0001>
module attributes {stable_mosaic.version = 11 : i64} {
  func.func @_equal_linear_kernel_f32(%arg0: i32, %arg1: i32, %arg2: i32, %arg3: memref<8x128xf32, #tpu.memory_space<vmem>>, %arg4: memref<128x128xf32, #tpu.memory_space<vmem>>, %arg5: memref<1x128xf32, #tpu.memory_space<vmem>>, %arg6: memref<8x128xf32, #tpu.memory_space<vmem>>) attributes {dimension_semantics = [#tpu.dimension_semantics<parallel>, #tpu.dimension_semantics<parallel>, #tpu.dimension_semantics<arbitrary>], iteration_bounds = array<i64: 1, 1, 1>, scalar_prefetch = 0 : i64, scratch_operands = 0 : i64, tpu.core_type = #tpu.core_type<tc>, window_params = [{transform_indices = @transform_0, window_bounds = array<i64: 8, 128>}, {transform_indices = @transform_1, window_bounds = array<i64: 128, 128>}, {transform_indices = @transform_2, window_bounds = array<i64: 1, 128>}, {transform_indices = @transform_3, window_bounds = array<i64: 8, 128>}]} {
    %c0_i32 = arith.constant 0 : i32
    %0 = arith.cmpi eq, %arg2, %c0_i32 : i32
    %1 = arith.extui %0 : i1 to i32
    %c0_i32_0 = arith.constant 0 : i32
    %2 = arith.cmpi ne, %1, %c0_i32_0 : i32
    scf.if %2 {
      %cst_10 = arith.constant 0.000000e+00 : f32
      %12 = vector.broadcast %cst_10 : f32 to vector<8x128xf32>
      %c0_11 = arith.constant 0 : index
      %c0_12 = arith.constant 0 : index
      %13 = vector.load %arg6[%c0_11, %c0_12] : memref<8x128xf32, #tpu.memory_space<vmem>>, vector<8x128xf32>
      tpu.vector_store %arg6[%c0_11, %c0_12], %12 {strides = array<i32>} : memref<8x128xf32, #tpu.memory_space<vmem>>, vector<8x128xf32>,
    } else {
    }
    %c0 = arith.constant 0 : index
    %c0_1 = arith.constant 0 : index
    %3 = vector.load %arg6[%c0, %c0_1] : memref<8x128xf32, #tpu.memory_space<vmem>>, vector<8x128xf32>
    %c0_2 = arith.constant 0 : index
    %c0_3 = arith.constant 0 : index
    %4 = vector.load %arg3[%c0_2, %c0_3] : memref<8x128xf32, #tpu.memory_space<vmem>>, vector<8x128xf32>
    %c0_4 = arith.constant 0 : index
    %c0_5 = arith.constant 0 : index
    %5 = vector.load %arg4[%c0_4, %c0_5] : memref<128x128xf32, #tpu.memory_space<vmem>>, vector<128x128xf32>
    %cst = arith.constant dense<0.000000e+00> : vector<8x128xf32>
    %6 = tpu.matmul %4, %5, %cst {dimension_numbers = #tpu.dot_dimension_numbers<[1], [0], [0], [1], [0, 0, 1, 1], [], []>} : vector<8x128xf32>, vector<128x128xf32>, vector<8x128xf32> -> vector<8x128xf32>
    %7 = arith.addf %3, %6 : vector<8x128xf32>
    %c0_6 = arith.constant 0 : index
    %c0_7 = arith.constant 0 : index
    %8 = vector.load %arg6[%c0_6, %c0_7] : memref<8x128xf32, #tpu.memory_space<vmem>>, vector<8x128xf32>
    tpu.vector_store %arg6[%c0_6, %c0_7], %7 {strides = array<i32>} : memref<8x128xf32, #tpu.memory_space<vmem>>, vector<8x128xf32>,
    %c0_i32_8 = arith.constant 0 : i32
    %9 = arith.cmpi eq, %arg2, %c0_i32_8 : i32
    %10 = arith.extui %9 : i1 to i32
    %c0_i32_9 = arith.constant 0 : i32
    %11 = arith.cmpi ne, %10, %c0_i32_9 : i32
    scf.if %11 {
      %c0_10 = arith.constant 0 : index
      %c0_11 = arith.constant 0 : index
      %12 = vector.load %arg6[%c0_10, %c0_11] : memref<8x128xf32, #tpu.memory_space<vmem>>, vector<8x128xf32>
      %cst_12 = arith.constant 0.176776692 : f32
      %13 = vector.broadcast %cst_12 : f32 to vector<8x128xf32>
      %14 = arith.mulf %12, %13 : vector<8x128xf32>
      %c0_13 = arith.constant 0 : index
      %c0_14 = arith.constant 0 : index
      %15 = vector.load %arg5[%c0_13, %c0_14] : memref<1x128xf32, #tpu.memory_space<vmem>>, vector<1x128xf32>
      %cst_15 = arith.constant 1.000000e+00 : f32
      %16 = vector.broadcast %cst_15 : f32 to vector<1x128xf32>
      %17 = arith.mulf %15, %16 : vector<1x128xf32>
      %18 = vector.broadcast %17 : vector<1x128xf32> to vector<8x128xf32>
      %19 = arith.addf %14, %18 : vector<8x128xf32>
      %c0_16 = arith.constant 0 : index
      %c0_17 = arith.constant 0 : index
      %20 = vector.load %arg6[%c0_16, %c0_17] : memref<8x128xf32, #tpu.memory_space<vmem>>, vector<8x128xf32>
      tpu.vector_store %arg6[%c0_16, %c0_17], %19 {strides = array<i32>} : memref<8x128xf32, #tpu.memory_space<vmem>>, vector<8x128xf32>,
    } else {
    }
    return
  }
  func.func @transform_0(%arg0: i32, %arg1: i32, %arg2: i32) -> (i32, i32) {
    %c0_i32 = arith.constant 0 : i32
    return %arg0, %arg2 : i32, i32
  }
  func.func @transform_1(%arg0: i32, %arg1: i32, %arg2: i32) -> (i32, i32) {
    %c0_i32 = arith.constant 0 : i32
    return %arg2, %arg1 : i32, i32
  }
  func.func @transform_2(%arg0: i32, %arg1: i32, %arg2: i32) -> (i32, i32) {
    %c0_i32 = arith.constant 0 : i32
    %c0_i32_0 = arith.constant 0 : i32
    return %c0_i32, %arg1 : i32, i32
  }
  func.func @transform_3(%arg0: i32, %arg1: i32, %arg2: i32) -> (i32, i32) {
    %c0_i32 = arith.constant 0 : i32
    return %arg0, %arg1 : i32, i32
  }
}

</mosaic_0001>

<bundles_post_ra>
// kernel: tpu_custom_call.1
= control target key start
LH: loop header
LB: loop body
LE: loop exit
PB: predicated region body
PF: predicated region fallthrough
CT: control target
= control target key end

     0   :  { %8 = vsyncpa [#allocation3], 0  ;;  %s331_s0 = inlined_call_operand.hbm [shape: f32[8,128], index: 0, kind: input, shape index: {}]   ;;  %s332_s1 = inlined_call_operand.hbm [shape: f32[128,128], index: 1, kind: input, shape index: {}]   ;;  %s333_s2 = inlined_call_operand.vmem [shape: f32[1,128], index: 2, kind: input, shape index: {}]   ;;  %s334_s3 = inlined_call_operand.hbm [shape: f32[8,128], index: 3, kind: output, shape index: {}]  }
   0x1   :  { %9 = vsyncpa [#allocation6], 0 }
   0x2   :  { %10 = vsyncpa [#allocation4], 0  ;;  %s292_s12 = smov [#allocation2]   ;;  %s293_s14 = smov [#allocation5]  }
   0x3   :  { %s17_s13 = sshll.u32 %s292_s12, 4  ;;  %s26_s15 = sshll.u32 %s293_s14, 4  ;;  %s18_s13 = int_to_ptr.vmem [resolvable:$true] %s17_s13  ;;  %s27_s15 = int_to_ptr.vmem [resolvable:$true] %s26_s15 }
   0x4   :  { %s234_s16 = scalar_lea.vmem %s18_s13, 128  ;;  %p239_p1 = scmp.lt.s32.totalorder %s18_s13, %s18_s13 }
   0x5   :  { %p235_p0 = scmp.ne.s32.totalorder %s18_s13, %s234_s16  ;;  %p240_p2 = scmp.lt.s32.totalorder %s234_s16, %s234_s16 }
   0x7   :  { %p241_p3 = por %p240_p2, %p239_p1 }
   0x9   :  { %p242_p4 = pnand %p241_p3, %p235_p0 }
   0xb   :  { %245 = shalt.err (!%p242_p4)
}
   0xc   :  { %20 = dma.hbm_to_vmem [thread:$0]  %s331_s0, 128, %s18_s13, [#allocation3]  }
   0xd   :  { %s254_s19 = scalar_lea.vmem %s27_s15, 2048  ;;  %p259_p6 = scmp.lt.s32.totalorder %s27_s15, %s27_s15 }
   0xe   :  { %p255_p5 = scmp.ne.s32.totalorder %s27_s15, %s254_s19  ;;  %p260_p7 = scmp.lt.s32.totalorder %s254_s19, %s254_s19 }
  0x10   :  { %p261_p8 = por %p260_p7, %p259_p6 }
  0x12   :  { %p262_p9 = pnand %p261_p8, %p255_p5 }
  0x14   :  { %265 = shalt.err (!%p262_p9)
}
  0x15   :  { %s294_s20 = smov 128   ;;  %s295_s21 = smov 8  }
  0x16   :  { %32 = dma.hbm_to_vmem [thread:$0]  %s332_s1, 2048, %s27_s15, [#allocation6], %s294_s20, %s294_s20, %s295_s21  }
  0x17   :  { %286 = dma.done.wait [#allocation3], 128  }
  0x18   :  { %287 = vsyncadd [#allocation3], 4294967168 }
  0x19   :  { %288 = dma.done.wait [#allocation6], 2048  }
  0x1a   :  { %289 = vsyncadd [#allocation6], 4294965248  ;;  %v296_v0 = vmov 0.0   ;;  %vm297_vm0 = vmmov 0   ;;  %v63_v1 = vld [vmem:[#allocation5 + $0x78] sm:$0xff]  ;;  %v62_v2 = vld [vmem:[#allocation5 + $0x70] sm:$0xff] }
  0x1b   :  { %184 = vmatprep.subr.mxu0 %v296_v0  ;;  %216 = vmatprep.mubr.msk.f32.mxu0 %vm297_vm0, %v296_v0  ;;  %v61_v3 = vld [vmem:[#allocation5 + $0x68] sm:$0xff]  ;;  %v60_v4 = vld [vmem:[#allocation5 + $0x60] sm:$0xff]  ;;  %v59_v5 = vld [vmem:[#allocation5 + $0x58] sm:$0xff]  ;;  %s298_s24 = smov [#allocation7]  }
  0x1c   :  { %185 = vmatpush3.msra.mxu0 %v63_v1  ;;  %v58_v6 = vld [vmem:[#allocation5 + $0x50] sm:$0xff]  ;;  %v57_v7 = vld [vmem:[#allocation5 + $0x48] sm:$0xff]  ;;  %v56_v8 = vld [vmem:[#allocation5 + $0x40] sm:$0xff]  ;;  %s156_s25 = sshll.u32 %s298_s24, 4  ;;  %s157_s25 = int_to_ptr.vmem [resolvable:$true] %s156_s25 }
  0x1d   :  { %186 = vmatprep.subr.mxu0 %v296_v0  ;;  %v55_v9 = vld [vmem:[#allocation5 + $0x38] sm:$0xff]  ;;  %v54_v10 = vld [vmem:[#allocation5 + $0x30] sm:$0xff]  ;;  %v53_v11 = vld [vmem:[#allocation5 + $0x28] sm:$0xff]  ;;  %s266_s26 = scalar_lea.vmem %s157_s25, 128  ;;  %p271_p11 = scmp.lt.s32.totalorder %s157_s25, %s157_s25 }
  0x1e   :  { %187 = vmatpush3.msra.mxu0 %v62_v2  ;;  %v52_v12 = vld [vmem:[#allocation5 + $0x20] sm:$0xff]  ;;  %v51_v13 = vld [vmem:[#allocation5 + $0x18] sm:$0xff]  ;;  %v50_v14 = vld [vmem:[#allocation5 + $0x10] sm:$0xff]  ;;  %p267_p10 = scmp.ne.s32.totalorder %s157_s25, %s266_s26  ;;  %p272_p12 = scmp.lt.s32.totalorder %s266_s26, %s266_s26 }
  0x1f   :  { %188 = vmatprep.subr.mxu0 %v296_v0  ;;  %v49_v15 = vld [vmem:[#allocation5 + $0x8] sm:$0xff]  ;;  %v48_v16 = vld [vmem:[#allocation5] sm:$0xff]  ;;  %v47_v17 = vld [vmem:[#allocation2] sm:$0xff] }
  0x20   :  { %189 = vmatpush3.msra.mxu0 %v61_v3  ;;  %v166_v20 = vld [vmem:[%s333_s2] ss:$0 sm:$0xff]  ;;  %p273_p13 = por %p272_p12, %p271_p11 }
  0x21   :  { %190 = vmatprep.subr.mxu0 %v296_v0 }
  0x22   :  { %191 = vmatpush3.msra.mxu0 %v60_v4  ;;  %p274_p0 = pnand %p273_p13, %p267_p10 }
  0x23   :  { %192 = vmatprep.subr.mxu0 %v296_v0 }
  0x24   :  { %193 = vmatpush3.msra.mxu0 %v59_v5 }
  0x25   :  { %194 = vmatprep.subr.mxu0 %v296_v0 }
  0x26   :  { %195 = vmatpush3.msra.mxu0 %v58_v6 }
  0x27   :  { %196 = vmatprep.subr.mxu0 %v296_v0 }
  0x28   :  { %197 = vmatpush3.msra.mxu0 %v57_v7 }
  0x29   :  { %198 = vmatprep.subr.mxu0 %v296_v0 }
  0x2a   :  { %199 = vmatpush3.msra.mxu0 %v56_v8 }
  0x2b   :  { %200 = vmatprep.subr.mxu0 %v296_v0 }
  0x2c   :  { %201 = vmatpush3.msra.mxu0 %v55_v9 }
  0x2d   :  { %202 = vmatprep.subr.mxu0 %v296_v0 }
  0x2e   :  { %203 = vmatpush3.msra.mxu0 %v54_v10 }
  0x2f   :  { %204 = vmatprep.subr.mxu0 %v296_v0 }
  0x30   :  { %205 = vmatpush3.msra.mxu0 %v53_v11 }
  0x31   :  { %206 = vmatprep.subr.mxu0 %v296_v0 }
  0x32   :  { %207 = vmatpush3.msra.mxu0 %v52_v12 }
  0x33   :  { %208 = vmatprep.subr.mxu0 %v296_v0 }
  0x34   :  { %209 = vmatpush3.msra.mxu0 %v51_v13 }
  0x35   :  { %210 = vmatprep.subr.mxu0 %v296_v0 }
  0x36   :  { %211 = vmatpush3.msra.mxu0 %v50_v14 }
  0x37   :  { %212 = vmatprep.subr.mxu0 %v296_v0 }
  0x38   :  { %213 = vmatpush3.msra.mxu0 %v49_v15 }
  0x39   :  { %214 = vmatprep.subr.mxu0 %v296_v0 }
  0x3a   :  { %215 = vmatpush3.msra.mxu0 %v48_v16 }
  0x3b   :  { %217 = vmatmul.mubr.f32.vlgmr.msra.gmra.mxu0 %v47_v17 }
  0xfb   :  { %v130_v18 = vpop.f32.mrf.mxu0 }
  0xfc   :  { %v140_v21 = vmul.f32 0.17677669, %v130_v18 }
  0xfd   :  { %v218_v19 = vpop.f32.mrf.mxu0 }
  0xfe   :  { %v148_v22 = vadd.f32 %v166_v20, %v140_v21 }
 0x100   :  { %149 = vst [vmem:[#allocation7] sm:$0xff] %v148_v22 }
 0x101   :  { %277 = shalt.err (!%p274_p0)
}
 0x102   :  { %159 = dma.vmem_to_hbm [thread:$0]  %s157_s25, 128, %s334_s3, [#allocation4]  }
 0x103   :  { %290 = dma.done.wait [#allocation4], 128  }
 0x104   :  { %291 = vsyncadd [#allocation4], 4294967168 }
 0x105   :  { %163 = vsyncpa [#allocation3], 1 }
 0x106   :  { %164 = vsyncpa [#allocation6], 1 }
 0x107   :  { %165 = vsyncpa [#allocation4], 1 }

</bundles_post_ra>
